<compile_context>
chip_gen: v6e
topology: v6e:2x2x1
jax: 0.10.0
libtpu: 0.0.40
codegen_flags: <defaults>
</compile_context>

<pallas_src>
import jax
import jax.numpy as jnp
from jax.experimental import pallas as pl
from jax.experimental.pallas import tpu as pltpu

_PAIRWISE_EPS = 1e-6     # torch F.pairwise_distance default eps (added to diff)
_LANE = 128
_SUBLANE = 8
_DEFAULT_CHUNK = 256     # rows processed per inner-loop step
_VMEM_BUDGET = 20 * 1024 * 1024   # for the 2 inputs x 2 pipeline buffers
_VMEM_LIMIT = 32 * 1024 * 1024    # scoped VMEM limit (safe on v5e/v6e/v7x)


def _round_up(x, m):
    return ((x + m - 1) // m) * m


def _round_down(x, m):
    return (x // m) * m


def _cdiv(a, b):
    return (a + b - 1) // b


def _pick_config(batch, feat, itemsize, block_rows=None, chunk_rows=None):
    """Static tiling configuration.

    Returns (tb, R, n_full, rem, num_tiles, steps_per_core, num_cores,
    need_mask): the kernel processes `tb`-row input tiles in `R`-row chunks
    (n_full full chunks plus one static `rem`-row remainder).
    """
    lanes = max(_round_up(feat, _LANE), _LANE)      # lane-padded row width
    per_row = 2 * 2 * lanes * itemsize + 16         # 2 inputs x 2 buffers
    tb = max(_SUBLANE, _round_down(_VMEM_BUDGET // per_row, _SUBLANE))
    if block_rows is not None:
        tb = max(_SUBLANE, _round_down(int(block_rows), _SUBLANE))
    chunk = int(chunk_rows) if chunk_rows is not None else _DEFAULT_CHUNK

    if batch <= tb:
        # Single tile covering the whole batch: blocks equal the full arrays,
        # so no masking / clamping / second-core axis is needed.
        tb = batch
        chunk = min(chunk, batch)
        n_full, rem = divmod(batch, chunk)
        return tb, chunk, n_full, rem, 1, 1, 1, False

    # Multi-tile: chunks_per_tile must be a multiple of 8 so the
    # (chunks_per_tile, R) label block obeys the sublane tiling rule.
    if tb >= 8 * chunk:
        tb = _round_down(tb, 8 * chunk)
    else:
        chunk = max(1, tb // 8)
        tb = 8 * chunk
    num_tiles = _cdiv(batch, tb)
    num_cores = 2                                   # engages the 2nd TC on v7x
    steps_per_core = _cdiv(num_tiles, num_cores)
    need_mask = (num_cores * steps_per_core * tb) != batch
    return tb, chunk, tb // chunk, 0, num_tiles, steps_per_core, num_cores, need_mask


def _make_kernel(*, margin, batch, block_rows, chunk_rows, n_full, rem,
                 steps_per_core, need_mask):
    """Kernel builder.  Everything closed over here is a Python int / float /
    bool, never a jnp scalar (that was the 'captures constants' bug)."""

    def _chunk_contrib(o1c, o2c, lab_row, row0, nrows):
        # o1c / o2c: (nrows, D) native dtype; lab_row: (1, nrows) f32.
        a = o1c.astype(jnp.float32)
        b = o2c.astype(jnp.float32)
        diff = a - b + _PAIRWISE_EPS
        d2 = jnp.sum(diff * diff, axis=-1, keepdims=True)        # (nrows, 1)
        if need_mask:
            rows = row0 + jax.lax.broadcasted_iota(jnp.int32, (nrows, 1), 0)
            d2 = jnp.where(rows < batch, d2, 0.0)   # ragged / duplicate rows
        d = jnp.sqrt(d2)
        neg = jnp.square(jnp.maximum(margin - d, 0.0))           # (nrows, 1)
        # Lane-major labels x sublane-major per-row values: bridge the two
        # layouts with two tiny dot products on the otherwise-idle MXU.
        # Padded rows contribute 0: d2 is masked to 0 and their label is 0.
        pos_sum = jnp.dot(1.0 - lab_row, d2,
                          preferred_element_type=jnp.float32)    # (1, 1)
        neg_sum = jnp.dot(lab_row, neg,
                          preferred_element_type=jnp.float32)    # (1, 1)
        return pos_sum + neg_sum

    def kernel(o1_ref, o2_ref, lab_ref, out_ref):
        c = pl.program_id(0)
        j = pl.program_id(1)
        tile = c * steps_per_core + j     # un-clamped tile id (for masking)

        @pl.when(j == 0)
        def _init():
            out_ref[...] = jnp.zeros_like(out_ref)

        acc = jnp.zeros((1, 1), jnp.float32)

        if n_full > 0:
            def body(k, carry):
                start = pl.multiple_of(k * chunk_rows, chunk_rows)
                o1c = o1_ref[pl.ds(start, chunk_rows), :]
                o2c = o2_ref[pl.ds(start, chunk_rows), :]
                lab_row = lab_ref[pl.ds(k, 1), :]
                row0 = tile * block_rows + start
                return carry + _chunk_contrib(o1c, o2c, lab_row, row0,
                                              chunk_rows)
            acc = jax.lax.fori_loop(0, n_full, body, acc)

        if rem > 0:                     # static remainder (single-tile case)
            start = n_full * chunk_rows
            o1c = o1_ref[pl.ds(start, rem), :]
            o2c = o2_ref[pl.ds(start, rem), :]
            lab_row = lab_ref[pl.ds(n_full, 1), pl.ds(0, rem)]
            row0 = tile * block_rows + start
            acc = acc + _chunk_contrib(o1c, o2c, lab_row, row0, rem)

        # (1,1) partial broadcast-accumulated over the resident (8,128) block:
        # every element of this core's block ends up holding its total.
        out_ref[...] += acc

    return kernel


def contrastive_loss(output1, output2, label, margin=2.0, *,
                     block_rows=None, chunk_rows=None):
    """output1/output2: (B, D) float arrays (any float dtype, kept native);
    label: (B,) or (B, 1).  Returns the scalar contrastive loss (f32)."""
    assert output1.ndim == 2 and output1.shape == output2.shape
    B, D = output1.shape
    lab = label.astype(jnp.float32).reshape(-1)
    assert lab.shape[0] == B

    itemsize = jnp.dtype(output1.dtype).itemsize
    (tb, R, n_full, rem, num_tiles, steps, nc,
     need_mask) = _pick_config(B, D, itemsize, block_rows, chunk_rows)
    cpt = n_full + (1 if rem else 0)               # chunks per tile

    # Lane-dense label layout: (num_blocks * chunks_per_tile, R) f32, zero
    # padded (a few KiB at most -- unlike padding the big inputs, this is
    # free).  Dense in HBM (~4*B bytes) instead of the 128-lane padded (B, 1)
    # column, and the zero padding guarantees ragged / duplicated tiles see
    # label == 0 so they contribute exactly zero.
    total = nc * steps * cpt * R
    if total != B:
        lab = jnp.pad(lab, (0, total - B))
    lab2d = lab.reshape(nc * steps * cpt, R)

    kernel = _make_kernel(margin=float(margin), batch=B, block_rows=tb,
                          chunk_rows=R, n_full=n_full, rem=rem,
                          steps_per_core=steps, need_mask=need_mask)

    def data_map(c, j):
        # Clamp so trailing duplicate steps re-use the last real tile (their
        # rows are masked out); consecutive identical indices let Pallas skip
        # the repeated DMA.
        return (jnp.minimum(c * steps + j, num_tiles - 1), 0)

    def label_map(c, j):
        return (c * steps + j, 0)      # the label array covers every (c, j)

    out = pl.pallas_call(
        kernel,
        out_shape=jax.ShapeDtypeStruct((nc * 8, 128), jnp.float32),
        grid=(nc, steps),
        in_specs=[
            pl.BlockSpec((tb, D), data_map),
            pl.BlockSpec((tb, D), data_map),
            pl.BlockSpec((cpt, R), label_map),
        ],
        out_specs=pl.BlockSpec((8, 128), lambda c, j: (c, 0)),
        compiler_params=pltpu.CompilerParams(
            dimension_semantics=("parallel", "arbitrary"),
            vmem_limit_bytes=_VMEM_LIMIT),
    )(output1, output2, lab2d)

    # Per-core partial sums live at rows 0, 8, ...; tiny reduce + 1/B here.
    return jnp.sum(out[0::8, 0]) / B


def _reference(output1, output2, label, margin=2.0):
    o1 = output1.astype(jnp.float32)
    o2 = output2.astype(jnp.float32)
    lab = label.astype(jnp.float32).reshape(-1, 1)
    d = jnp.sqrt(jnp.sum(jnp.square(o1 - o2 + _PAIRWISE_EPS),
                         axis=-1, keepdims=True))
    return jnp.mean((1.0 - lab) * jnp.square(d)
                    + lab * jnp.square(jnp.maximum(margin - d, 0.0)))


if __name__ == "__main__":
    key = jax.random.PRNGKey(0)
    keys = jax.random.split(key, 15)

    def run_case(i, B, D, dtype, **kw):
        o1 = jax.random.normal(keys[3 * i + 0], (B, D),
                               dtype=jnp.float32).astype(dtype)
        o2 = jax.random.normal(keys[3 * i + 1], (B, D),
                               dtype=jnp.float32).astype(dtype)
        lab = jax.random.bernoulli(keys[3 * i + 2], 0.5,
                                   (B, 1)).astype(jnp.float32)
        got = jax.block_until_ready(
            contrastive_loss(o1, o2, lab, margin=2.0, **kw))
        want = _reference(o1, o2, lab, margin=2.0)
        assert jnp.allclose(got, want, rtol=1e-4, atol=1e-5), (i, got, want)

    # 1) tiny batch, single full-array tile.
    run_case(0, 8, 32, jnp.float32)
    # 2) batch not a multiple of 8 -> full-array blocks, no input padding.
    run_case(1, 13, 32, jnp.float32)
    # 3) bf16 inputs passed through natively (f32 cast happens in-kernel).
    run_case(2, 8, 32, jnp.bfloat16)
    # 4) multi-tile path with small overrides: 2 tiles across the 2-core grid
    #    axis, ragged last tile -> row mask, chunked fori_loop inside a tile.
    run_case(3, 1800, 64, jnp.float32, block_rows=1024)
    # 5) odd tile count -> one clamped duplicate tile on the second core axis.
    run_case(4, 2500, 64, jnp.float32, block_rows=1024)

    print("KERNEL_OK")
</pallas_src>

<mosaic_0001>
module attributes {stable_mosaic.version = 11 : i64} {
  func.func @kernel(%arg0: i32, %arg1: i32, %arg2: memref<8x32xf32, #tpu.memory_space<vmem>>, %arg3: memref<8x32xf32, #tpu.memory_space<vmem>>, %arg4: memref<1x8xf32, #tpu.memory_space<vmem>>, %arg5: memref<8x128xf32, #tpu.memory_space<vmem>>) attributes {dimension_semantics = [#tpu.dimension_semantics<parallel>, #tpu.dimension_semantics<arbitrary>], iteration_bounds = array<i64: 1, 1>, scalar_prefetch = 0 : i64, scratch_operands = 0 : i64, tpu.core_type = #tpu.core_type<tc>, window_params = [{transform_indices = @transform_0, window_bounds = array<i64: 8, 32>}, {transform_indices = @transform_1, window_bounds = array<i64: 8, 32>}, {transform_indices = @transform_2, window_bounds = array<i64: 1, 8>}, {transform_indices = @transform_3, window_bounds = array<i64: 8, 128>}]} {
    %c0_i32 = arith.constant 0 : i32
    %0 = arith.cmpi eq, %arg1, %c0_i32 : i32
    %1 = arith.extui %0 : i1 to i32
    %c0_i32_0 = arith.constant 0 : i32
    %2 = arith.cmpi ne, %1, %c0_i32_0 : i32
    scf.if %2 {
      %cst_15 = arith.constant 0.000000e+00 : f32
      %34 = vector.broadcast %cst_15 : f32 to vector<8x128xf32>
      %c0_16 = arith.constant 0 : index
      %c0_17 = arith.constant 0 : index
      %35 = vector.load %arg5[%c0_16, %c0_17] : memref<8x128xf32, #tpu.memory_space<vmem>>, vector<8x128xf32>
      tpu.vector_store %arg5[%c0_16, %c0_17], %34 {strides = array<i32>} : memref<8x128xf32, #tpu.memory_space<vmem>>, vector<8x128xf32>,
    } else {
    }
    %cst = arith.constant 0.000000e+00 : f32
    %3 = vector.broadcast %cst : f32 to vector<1x1xf32>
    %c0_i32_1 = arith.constant 0 : i32
    %c8_i32 = arith.constant 8 : i32
    %4 = arith.muli %c0_i32_1, %c8_i32 : i32
    %5 = tpu.assume_multiple %4, 8 : i32
    %6 = arith.index_cast %5 : i32 to index
    %c0 = arith.constant 0 : index
    %7 = vector.load %arg2[%6, %c0] : memref<8x32xf32, #tpu.memory_space<vmem>>, vector<8x32xf32>
    %8 = arith.index_cast %5 : i32 to index
    %c0_2 = arith.constant 0 : index
    %9 = vector.load %arg3[%8, %c0_2] : memref<8x32xf32, #tpu.memory_space<vmem>>, vector<8x32xf32>
    %10 = arith.index_cast %c0_i32_1 : i32 to index
    %c0_3 = arith.constant 0 : index
    %11 = vector.load %arg4[%10, %c0_3] : memref<1x8xf32, #tpu.memory_space<vmem>>, vector<1x8xf32>
    %12 = arith.subf %7, %9 : vector<8x32xf32>
    %cst_4 = arith.constant 9.99999997E-7 : f32
    %13 = vector.broadcast %cst_4 : f32 to vector<8x32xf32>
    %14 = arith.addf %12, %13 : vector<8x32xf32>
    %15 = arith.mulf %14, %14 : vector<8x32xf32>
    %cst_5 = arith.constant dense<0.000000e+00> : vector<8xf32>
    %16 = vector.multi_reduction <add>, %15, %cst_5 [1] : vector<8x32xf32> to vector<8xf32>
    %17 = vector.shape_cast %16 : vector<8xf32> to vector<8x1xf32>
    %18 = math.sqrt %17 : vector<8x1xf32>
    %cst_6 = arith.constant 2.000000e+00 : f32
    %19 = vector.broadcast %cst_6 : f32 to vector<8x1xf32>
    %20 = arith.subf %19, %18 : vector<8x1xf32>
    %cst_7 = arith.constant 0.000000e+00 : f32
    %21 = vector.broadcast %cst_7 : f32 to vector<8x1xf32>
    %22 = arith.maximumf %20, %21 : vector<8x1xf32>
    %23 = arith.mulf %22, %22 : vector<8x1xf32>
    %cst_8 = arith.constant 1.000000e+00 : f32
    %24 = vector.broadcast %cst_8 : f32 to vector<1x8xf32>
    %25 = arith.subf %24, %11 : vector<1x8xf32>
    %cst_9 = arith.constant dense<0.000000e+00> : vector<1x1xf32>
    %26 = tpu.matmul %25, %17, %cst_9 {dimension_numbers = #tpu.dot_dimension_numbers<[1], [0], [0], [1], [0, 0, 1, 1], [], []>} : vector<1x8xf32>, vector<8x1xf32>, vector<1x1xf32> -> vector<1x1xf32>
    %cst_10 = arith.constant dense<0.000000e+00> : vector<1x1xf32>
    %27 = tpu.matmul %11, %23, %cst_10 {dimension_numbers = #tpu.dot_dimension_numbers<[1], [0], [0], [1], [0, 0, 1, 1], [], []>} : vector<1x8xf32>, vector<8x1xf32>, vector<1x1xf32> -> vector<1x1xf32>
    %28 = arith.addf %26, %27 : vector<1x1xf32>
    %29 = arith.addf %3, %28 : vector<1x1xf32>
    %c1_i32 = arith.constant 1 : i32
    %c0_11 = arith.constant 0 : index
    %c0_12 = arith.constant 0 : index
    %30 = vector.load %arg5[%c0_11, %c0_12] : memref<8x128xf32, #tpu.memory_space<vmem>>, vector<8x128xf32>
    %31 = vector.broadcast %29 : vector<1x1xf32> to vector<8x128xf32>
    %32 = arith.addf %30, %31 : vector<8x128xf32>
    %c0_13 = arith.constant 0 : index
    %c0_14 = arith.constant 0 : index
    %33 = vector.load %arg5[%c0_13, %c0_14] : memref<8x128xf32, #tpu.memory_space<vmem>>, vector<8x128xf32>
    tpu.vector_store %arg5[%c0_13, %c0_14], %32 {strides = array<i32>} : memref<8x128xf32, #tpu.memory_space<vmem>>, vector<8x128xf32>,
    return
  }
  func.func @transform_0(%arg0: i32, %arg1: i32) -> (i32, i32) {
    %c1_i32 = arith.constant 1 : i32
    %0 = arith.muli %arg0, %c1_i32 : i32
    %1 = arith.addi %0, %arg1 : i32
    %c0_i32 = arith.constant 0 : i32
    %2 = arith.minsi %1, %c0_i32 : i32
    %c0_i32_0 = arith.constant 0 : i32
    %c0_i32_1 = arith.constant 0 : i32
    return %2, %c0_i32_0 : i32, i32
  }
  func.func @transform_1(%arg0: i32, %arg1: i32) -> (i32, i32) {
    %c1_i32 = arith.constant 1 : i32
    %0 = arith.muli %arg0, %c1_i32 : i32
    %1 = arith.addi %0, %arg1 : i32
    %c0_i32 = arith.constant 0 : i32
    %2 = arith.minsi %1, %c0_i32 : i32
    %c0_i32_0 = arith.constant 0 : i32
    %c0_i32_1 = arith.constant 0 : i32
    return %2, %c0_i32_0 : i32, i32
  }
  func.func @transform_2(%arg0: i32, %arg1: i32) -> (i32, i32) {
    %c1_i32 = arith.constant 1 : i32
    %0 = arith.muli %arg0, %c1_i32 : i32
    %1 = arith.addi %0, %arg1 : i32
    %c0_i32 = arith.constant 0 : i32
    %c0_i32_0 = arith.constant 0 : i32
    return %1, %c0_i32 : i32, i32
  }
  func.func @transform_3(%arg0: i32, %arg1: i32) -> (i32, i32) {
    %c0_i32 = arith.constant 0 : i32
    %c0_i32_0 = arith.constant 0 : i32
    return %arg0, %c0_i32 : i32, i32
  }
}

</mosaic_0001>

<bundles_post_ra>
// kernel: tpu_custom_call.1
= control target key start
LH: loop header
LB: loop body
LE: loop exit
PB: predicated region body
PF: predicated region fallthrough
CT: control target
= control target key end

     0   :  { %8 = vsyncpa [#allocation3], 0  ;;  %s403_s0 = inlined_call_operand.hbm [shape: f32[8,32], index: 0, kind: input, shape index: {}]   ;;  %s404_s1 = inlined_call_operand.hbm [shape: f32[8,32], index: 1, kind: input, shape index: {}]   ;;  %s405_s2 = inlined_call_operand.vmem [shape: f32[1,8], index: 2, kind: input, shape index: {}]   ;;  %s406_s3 = inlined_call_operand.hbm [shape: f32[8,128], index: 3, kind: output, shape index: {}]  }
   0x1   :  { %9 = vsyncpa [#allocation6], 0 }
   0x2   :  { %10 = vsyncpa [#allocation4], 0  ;;  %s364_s12 = smov [#allocation2]   ;;  %s365_s14 = smov [#allocation5]  }
   0x3   :  { %s22_s13 = sshll.u32 %s364_s12, 4  ;;  %s37_s15 = sshll.u32 %s365_s14, 4  ;;  %s23_s13 = int_to_ptr.vmem [resolvable:$true] %s22_s13  ;;  %s38_s15 = int_to_ptr.vmem [resolvable:$true] %s37_s15 }
   0x4   :  { %s306_s16 = scalar_lea.vmem %s23_s13, 128  ;;  %p311_p1 = scmp.lt.s32.totalorder %s23_s13, %s23_s13 }
   0x5   :  { %p307_p0 = scmp.ne.s32.totalorder %s23_s13, %s306_s16  ;;  %p312_p2 = scmp.lt.s32.totalorder %s306_s16, %s306_s16 }
   0x7   :  { %p313_p3 = por %p312_p2, %p311_p1 }
   0x9   :  { %p314_p4 = pnand %p313_p3, %p307_p0 }
   0xb   :  { %317 = shalt.err (!%p314_p4)
}
   0xc   :  { %25 = dma.hbm_to_vmem [thread:$0]  %s403_s0, 128, %s23_s13, [#allocation3]  }
   0xd   :  { %s326_s19 = scalar_lea.vmem %s38_s15, 128  ;;  %p331_p6 = scmp.lt.s32.totalorder %s38_s15, %s38_s15 }
   0xe   :  { %p327_p5 = scmp.ne.s32.totalorder %s38_s15, %s326_s19  ;;  %p332_p7 = scmp.lt.s32.totalorder %s326_s19, %s326_s19 }
  0x10   :  { %p333_p8 = por %p332_p7, %p331_p6 }
  0x12   :  { %p334_p9 = pnand %p333_p8, %p327_p5 }
  0x14   :  { %337 = shalt.err (!%p334_p9)
}
  0x15   :  { %40 = dma.hbm_to_vmem [thread:$0]  %s404_s1, 128, %s38_s15, [#allocation6]  }
  0x16   :  { %358 = dma.done.wait [#allocation3], 128  }
  0x17   :  { %359 = vsyncadd [#allocation3], 4294967168 }
  0x18   :  { %360 = dma.done.wait [#allocation6], 128  }
  0x19   :  { %361 = vsyncadd [#allocation6], 4294967168  ;;  %v366_v0 = vmov 0.0   ;;  %v74_v1 = vld [vmem:[#allocation2] sm:$0xff]  ;;  %v75_v2 = vld [vmem:[#allocation5] sm:$0xff]  ;;  %vm80_vm0 = vcmask 261120  }
  0x1a   :  { %284 = vmatprep.subr.mxu1 %v366_v0  ;;  %279 = vmatprep.subr.mxu0 %v366_v0  ;;  %v77_v3 = vsub.f32 %v74_v1, %v75_v2  ;;  %vm367_vm1 = vmmov 0   ;;  %v76_v7 = vld [vmem:[%s405_s2] sm:$0x1]  ;;  %vm95_vm2 = vcmask 64512   ;;  %s368_s2 = smov [#allocation7]  }
  0x1b   :  { %286 = vmatprep.mubr.msk.f32.mxu1 %vm367_vm1, %v366_v0  ;;  %281 = vmatprep.mubr.msk.f32.mxu0 %vm367_vm1, %v366_v0  ;;  %v94_v8 = vsub.f32 1.0, %v76_v7  ;;  %s256_s22 = sshll.u32 %s368_s2, 4  ;;  %s257_s22 = int_to_ptr.vmem [resolvable:$true] %s256_s22 }
  0x1c   :  { %v78_v4 = vadd.f32 1e-06, %v77_v3  ;;  %s338_s24 = scalar_lea.vmem %s257_s22, 128  ;;  %p343_p11 = scmp.lt.s32.totalorder %s257_s22, %s257_s22 }
  0x1d   :  { %p339_p10 = scmp.ne.s32.totalorder %s257_s22, %s338_s24  ;;  %p344_p12 = scmp.lt.s32.totalorder %s338_s24, %s338_s24 }
  0x1e   :  { %v79_v5 = vmul.f32 %v78_v4, %v78_v4 }
  0x1f   :  { %p345_p13 = por %p344_p12, %p343_p11 }
  0x20   :  { %v81_v6 = vsel %vm80_vm0, %v79_v5, 0.0 }
  0x21   :  { %82 = vadd.xlane.f32.xlu0 %v81_v6  ;;  %p346_p0 = pnand %p345_p13, %p339_p10 }
  0xaa   :  { %v83_v9 = vpop.xlane.xlu0 %82 }
  0xab   :  { %296 = vrsqrt.f32 %v83_v9  ;;  %285 = vmatpush3.msra.mxu1 %v83_v9  ;;  %vm86_vm3 = vcmp.eq.f32.partialorder %v83_v9, inf  ;;  %v89_v12 = vand.u32 2147483648, %v83_v9  ;;  %vm88_vm4 = vcmp.eq.f32.partialorder %v83_v9, 0.0 }
  0xac   :  { %287 = vmatmul.mubr.msk.f32.vlgmr.msra.gmra.mxu1 %vm95_vm2, %v94_v8 }
  0xb8   :  { %v297_v10 = vpop.eup %296 }
  0xb9   :  { %v85_v11 = vmul.f32 %v297_v10, %v83_v9 }
  0xbb   :  { %v87_v13 = vsel %vm86_vm3, %v83_v9, %v85_v11 }
  0xbc   :  { %v90_v14 = vsel %vm88_vm4, %v89_v12, %v87_v13 }
  0xbd   :  { %v91_v15 = vsub.f32 2.0, %v90_v14 }
  0xbf   :  { %v92_v16 = vmax.f32 %v91_v15, 0.0 }
  0xc1   :  { %v93_v17 = vmul.f32 %v92_v16, %v92_v16 }
  0xc3   :  { %280 = vmatpush3.msra.mxu0 %v93_v17 }
  0xc4   :  { %282 = vmatmul.mubr.msk.f32.vlgmr.msra.gmra.mxu0 %vm95_vm2, %v76_v7 }
 0x16c   :  { %v238_v18 = vpop.f32.mrf.mxu1 }
 0x16e   :  { %v288_v19 = vpop.f32.mrf.mxu1 }
 0x184   :  { %v165_v20 = vpop.f32.mrf.mxu0 }
 0x185   :  { %v239_v21 = vadd.f32 %v238_v18, %v165_v20 }
 0x186   :  { %v283_v22 = vpop.f32.mrf.mxu0 }
 0x187   :  { %289 = vpush %v239_v21 }
 0x1b8   :  { %s290_s23 = spop %289 }
 0x1b9   :  { %v246_v23 = vstv %s290_s23 }
 0x1ba   :  { %249 = vst [vmem:[#allocation7] sm:$0xff] %v246_v23 }
 0x1bb   :  { %349 = shalt.err (!%p346_p0)
}
 0x1bc   :  { %259 = dma.vmem_to_hbm [thread:$0]  %s257_s22, 128, %s406_s3, [#allocation4]  }
 0x1bd   :  { %362 = dma.done.wait [#allocation4], 128  }
 0x1be   :  { %363 = vsyncadd [#allocation4], 4294967168 }
 0x1bf   :  { %263 = vsyncpa [#allocation3], 1 }
 0x1c0   :  { %264 = vsyncpa [#allocation6], 1 }
 0x1c1   :  { %265 = vsyncpa [#allocation4], 1 }

</bundles_post_ra>
